<compile_context>
chip_gen: v6e
topology: v6e:2x2x1
jax: 0.10.0
libtpu: 0.0.40
codegen_flags: <defaults>
</compile_context>

<pallas_src>
import jax
import jax.numpy as jnp
from jax.experimental import pallas as pl
from jax.experimental.pallas import tpu as pltpu


def _round_up(x, m):
    return ((x + m - 1) // m) * m


def _padded_tile_bytes(shape, dtype):
    """Approximate VMEM footprint of a 2-D block after (8, 128) layout padding."""
    rows, cols = shape
    return _round_up(rows, 8) * _round_up(cols, 128) * jnp.dtype(dtype).itemsize


def _ica_kernel(xt_ref, w1_ref, b1_ref, w2_ref, b2_ref,
                w3_ref, b3_ref, w4_ref, b4_ref, out_ref):
    """One batch tile; batch lives on the lane (last) axis.

    xt_ref : (input_dim, tile)   io dtype (f32 or bf16)
    wN_ref : torch layout (out_features, in_features), io dtype
    bN_ref : (out_features, 1), float32
    out_ref: (input_dim, tile)   io dtype
    """
    x = xt_ref[...]                                                  # (in, tile)

    # ---- encoder ----
    h1 = jnp.dot(w1_ref[...], x,
                 preferred_element_type=jnp.float32) + b1_ref[...]   # (hidden, tile) f32
    h1 = jnp.maximum(h1, 0.0)                                        # ReLU (VPU, f32)
    s = jnp.dot(w2_ref[...], h1.astype(w2_ref.dtype),
                preferred_element_type=jnp.float32) + b2_ref[...]    # (source, tile) f32
    s = jnp.tanh(s)                                                  # Tanh (EUP, f32)

    # ---- decoder ----
    h2 = jnp.dot(w3_ref[...], s.astype(w3_ref.dtype),
                 preferred_element_type=jnp.float32) + b3_ref[...]   # (hidden, tile) f32
    h2 = jnp.maximum(h2, 0.0)                                        # ReLU (VPU, f32)
    y = jnp.dot(w4_ref[...], h2.astype(w4_ref.dtype),
                preferred_element_type=jnp.float32) + b4_ref[...]    # (input, tile) f32

    out_ref[...] = y.astype(out_ref.dtype)                           # lane-dense store


def nonlinear_ica_forward(x, params, *, batch_tile=None, io_dtype=None):
    """NonlinearICA forward pass as a single fused Pallas kernel.

    x:      (B, input_dim)
    params: torch-layout weights  wN (out, in)  and biases  bN (out, 1):
            w1 (hidden, input), w2 (source, hidden), w3 (hidden, source),
            w4 (input, hidden).
    batch_tile: rows per grid step (rounded up to a multiple of 128).
    io_dtype:   HBM dtype for x / weights / output (e.g. jnp.bfloat16 on
                v6e/v7x).  Accumulation and activations stay float32.
    """
    B, input_dim = x.shape
    hidden_dim = params["w1"].shape[0]
    source_dim = params["w2"].shape[0]
    assert params["w1"].shape == (hidden_dim, input_dim)
    assert params["w4"].shape == (input_dim, hidden_dim)

    io_dtype = jnp.dtype(io_dtype) if io_dtype is not None else jnp.dtype(x.dtype)

    # ---- batch tiling: batch is on lanes, so tiles are multiples of 128. ----
    if batch_tile is None:
        b128 = _round_up(B, 128)
        if b128 <= 256:
            batch_tile = b128                     # toy sizes: 1-2 steps
        else:
            # >= 2 grid steps so both v7x TensorCores get work; capped at 2048
            # lanes so double-buffered I/O stays far below v7x's 64 MiB VMEM.
            batch_tile = min(2048, _round_up((b128 + 1) // 2, 128))
    batch_tile = _round_up(batch_tile, 128)
    b_pad = _round_up(B, batch_tile)
    grid = (b_pad // batch_tile,)

    # Weights travel in io_dtype (bf16 halves HBM bytes); biases stay f32 so
    # the bias add / ReLU / tanh run in f32 (required on v5e, free elsewhere).
    w1 = params["w1"].astype(io_dtype)
    w2 = params["w2"].astype(io_dtype)
    w3 = params["w3"].astype(io_dtype)
    w4 = params["w4"].astype(io_dtype)
    b1 = params["b1"].astype(jnp.float32)
    b2 = params["b2"].astype(jnp.float32)
    b3 = params["b3"].astype(jnp.float32)
    b4 = params["b4"].astype(jnp.float32)

    # Layout plumbing (outside the kernel): pad batch to a tile multiple and
    # transpose so batch sits on the lane axis -> every kernel store is an
    # unmasked, full 128-lane vst.
    x_c = x.astype(io_dtype)
    if b_pad != B:
        x_c = jnp.pad(x_c, ((0, b_pad - B), (0, 0)))
    x_t = x_c.T                                                       # (input_dim, b_pad)

    io_spec = pl.BlockSpec((input_dim, batch_tile), lambda i: (0, i))

    def resident(shape):
        # Constant index_map -> Pallas re-uses the same VMEM block across grid
        # steps (DMA only on step 0).  Weights are tiny, so double-buffer VMEM
        # overhead is negligible and pipeline_mode=pl.Buffered(1) is skipped.
        return pl.BlockSpec(shape, lambda i: (0, 0))

    in_specs = [
        io_spec,
        resident((hidden_dim, input_dim)), resident((hidden_dim, 1)),    # w1, b1
        resident((source_dim, hidden_dim)), resident((source_dim, 1)),   # w2, b2
        resident((hidden_dim, source_dim)), resident((hidden_dim, 1)),   # w3, b3
        resident((input_dim, hidden_dim)), resident((input_dim, 1)),     # w4, b4
    ]

    # Explicit VMEM budget: double-buffered x/out tiles + resident weights +
    # f32 activation temps, with margin.  Kept well under v7x's 64 MiB VMEM.
    io_blk = _padded_tile_bytes((input_dim, batch_tile), io_dtype)
    w_tot = sum(_padded_tile_bytes(a.shape, a.dtype)
                for a in (w1, b1, w2, b2, w3, b3, w4, b4))
    act = (2 * _padded_tile_bytes((hidden_dim, batch_tile), jnp.float32)
           + _padded_tile_bytes((source_dim, batch_tile), jnp.float32)
           + _padded_tile_bytes((input_dim, batch_tile), jnp.float32))
    vmem_limit = int(min(max(4 * io_blk + 2 * w_tot + 2 * act + (2 << 20),
                             8 << 20),
                         48 << 20))

    out_t = pl.pallas_call(
        _ica_kernel,
        out_shape=jax.ShapeDtypeStruct((input_dim, b_pad), io_dtype),
        grid_spec=pltpu.PrefetchScalarGridSpec(
            num_scalar_prefetch=0,
            grid=grid,
            in_specs=in_specs,
            out_specs=io_spec,
        ),
        compiler_params=pltpu.CompilerParams(
            dimension_semantics=("parallel",),   # batch tiles are independent
            vmem_limit_bytes=vmem_limit,
        ),
    )(x_t, w1, b1, w2, b2, w3, b3, w4, b4)

    return out_t.T[:B]                                               # (B, input_dim)


def init_params(key, input_dim, hidden_dim, source_dim, dtype=jnp.float32):
    """Torch-layout init mimicking nn.Linear's U(-1/sqrt(fan_in), +1/sqrt(fan_in))."""
    def linear(k, fan_in, fan_out):
        kw, kb = jax.random.split(k)
        bound = 1.0 / jnp.sqrt(float(fan_in))
        w = jax.random.uniform(kw, (fan_out, fan_in), dtype, -bound, bound)
        b = jax.random.uniform(kb, (fan_out, 1), dtype, -bound, bound)
        return w, b

    k1, k2, k3, k4 = jax.random.split(key, 4)
    w1, b1 = linear(k1, input_dim, hidden_dim)
    w2, b2 = linear(k2, hidden_dim, source_dim)
    w3, b3 = linear(k3, source_dim, hidden_dim)
    w4, b4 = linear(k4, hidden_dim, input_dim)
    return dict(w1=w1, b1=b1, w2=w2, b2=b2, w3=w3, b3=b3, w4=w4, b4=b4)


def reference_forward(x, p):
    """Pure-JAX reference (same math as the PyTorch module)."""
    h1 = jnp.maximum(x @ p["w1"].T + p["b1"].T, 0.0)
    s = jnp.tanh(h1 @ p["w2"].T + p["b2"].T)
    h2 = jnp.maximum(s @ p["w3"].T + p["b3"].T, 0.0)
    return h2 @ p["w4"].T + p["b4"].T


if __name__ == "__main__":
    input_dim, hidden_dim, source_dim = 16, 32, 8

    key = jax.random.PRNGKey(0)
    kx, kp, kx2 = jax.random.split(key, 3)
    params = init_params(kp, input_dim, hidden_dim, source_dim)

    # 1) Tiny batch (module-spec sizes): single 128-lane tile (batch zero-padded).
    x_small = jax.random.normal(kx, (8, input_dim), jnp.float32)
    out_small = jax.block_until_ready(nonlinear_ica_forward(x_small, params))
    ref_small = reference_forward(x_small, params)
    assert out_small.shape == (8, input_dim)
    assert jnp.allclose(out_small, ref_small, atol=1e-4, rtol=1e-4), "f32 small mismatch"

    # 2) Tiled batch: 4 grid steps of 128 lanes each ("parallel" axis, megacore-shardable).
    x_big = jax.random.normal(kx2, (512, input_dim), jnp.float32)
    out_big = jax.block_until_ready(
        nonlinear_ica_forward(x_big, params, batch_tile=128))
    ref_big = reference_forward(x_big, params)
    assert jnp.allclose(out_big, ref_big, atol=1e-4, rtol=1e-4), "f32 tiled mismatch"

    # 3) bf16 HBM I/O path (f32 accumulation + f32 activations inside the kernel).
    out_bf16 = jax.block_until_ready(
        nonlinear_ica_forward(x_big, params, batch_tile=256, io_dtype=jnp.bfloat16))
    assert out_bf16.dtype == jnp.bfloat16
    err = jnp.max(jnp.abs(out_bf16.astype(jnp.float32) - ref_big))
    assert err < 0.1, f"bf16 path error too large: {err}"

    print("KERNEL_OK")
</pallas_src>

<mosaic_0001>
module attributes {stable_mosaic.version = 11 : i64} {
  func.func @_ica_kernel(%arg0: i32, %arg1: memref<16x128xf32, #tpu.memory_space<vmem>>, %arg2: memref<32x16xf32, #tpu.memory_space<vmem>>, %arg3: memref<32x1xf32, #tpu.memory_space<vmem>>, %arg4: memref<8x32xf32, #tpu.memory_space<vmem>>, %arg5: memref<8x1xf32, #tpu.memory_space<vmem>>, %arg6: memref<32x8xf32, #tpu.memory_space<vmem>>, %arg7: memref<32x1xf32, #tpu.memory_space<vmem>>, %arg8: memref<16x32xf32, #tpu.memory_space<vmem>>, %arg9: memref<16x1xf32, #tpu.memory_space<vmem>>, %arg10: memref<16x128xf32, #tpu.memory_space<vmem>>) attributes {dimension_semantics = [#tpu.dimension_semantics<parallel>], iteration_bounds = array<i64: 1>, scalar_prefetch = 0 : i64, scratch_operands = 0 : i64, tpu.core_type = #tpu.core_type<tc>, window_params = [{transform_indices = @transform_0, window_bounds = array<i64: 16, 128>}, {pipeline_mode = #tpu.pipeline_mode<synchronous>, transform_indices = @transform_1, window_bounds = array<i64: 32, 16>}, {pipeline_mode = #tpu.pipeline_mode<synchronous>, transform_indices = @transform_2, window_bounds = array<i64: 32, 1>}, {pipeline_mode = #tpu.pipeline_mode<synchronous>, transform_indices = @transform_3, window_bounds = array<i64: 8, 32>}, {pipeline_mode = #tpu.pipeline_mode<synchronous>, transform_indices = @transform_4, window_bounds = array<i64: 8, 1>}, {pipeline_mode = #tpu.pipeline_mode<synchronous>, transform_indices = @transform_5, window_bounds = array<i64: 32, 8>}, {pipeline_mode = #tpu.pipeline_mode<synchronous>, transform_indices = @transform_6, window_bounds = array<i64: 32, 1>}, {pipeline_mode = #tpu.pipeline_mode<synchronous>, transform_indices = @transform_7, window_bounds = array<i64: 16, 32>}, {pipeline_mode = #tpu.pipeline_mode<synchronous>, transform_indices = @transform_8, window_bounds = array<i64: 16, 1>}, {transform_indices = @transform_9, window_bounds = array<i64: 16, 128>}]} {
    %c0 = arith.constant 0 : index
    %c0_0 = arith.constant 0 : index
    %0 = vector.load %arg1[%c0, %c0_0] : memref<16x128xf32, #tpu.memory_space<vmem>>, vector<16x128xf32>
    %c0_1 = arith.constant 0 : index
    %c0_2 = arith.constant 0 : index
    %1 = vector.load %arg2[%c0_1, %c0_2] : memref<32x16xf32, #tpu.memory_space<vmem>>, vector<32x16xf32>
    %cst = arith.constant dense<0.000000e+00> : vector<32x128xf32>
    %2 = tpu.matmul %1, %0, %cst {dimension_numbers = #tpu.dot_dimension_numbers<[1], [0], [0], [1], [0, 0, 1, 1], [], []>} : vector<32x16xf32>, vector<16x128xf32>, vector<32x128xf32> -> vector<32x128xf32>
    %c0_3 = arith.constant 0 : index
    %c0_4 = arith.constant 0 : index
    %3 = vector.load %arg3[%c0_3, %c0_4] : memref<32x1xf32, #tpu.memory_space<vmem>>, vector<32x1xf32>
    %4 = vector.broadcast %3 : vector<32x1xf32> to vector<32x128xf32>
    %5 = arith.addf %2, %4 : vector<32x128xf32>
    %cst_5 = arith.constant 0.000000e+00 : f32
    %6 = vector.broadcast %cst_5 : f32 to vector<32x128xf32>
    %7 = arith.maximumf %5, %6 : vector<32x128xf32>
    %c0_6 = arith.constant 0 : index
    %c0_7 = arith.constant 0 : index
    %8 = vector.load %arg4[%c0_6, %c0_7] : memref<8x32xf32, #tpu.memory_space<vmem>>, vector<8x32xf32>
    %cst_8 = arith.constant dense<0.000000e+00> : vector<8x128xf32>
    %9 = tpu.matmul %8, %7, %cst_8 {dimension_numbers = #tpu.dot_dimension_numbers<[1], [0], [0], [1], [0, 0, 1, 1], [], []>} : vector<8x32xf32>, vector<32x128xf32>, vector<8x128xf32> -> vector<8x128xf32>
    %c0_9 = arith.constant 0 : index
    %c0_10 = arith.constant 0 : index
    %10 = vector.load %arg5[%c0_9, %c0_10] : memref<8x1xf32, #tpu.memory_space<vmem>>, vector<8x1xf32>
    %11 = vector.broadcast %10 : vector<8x1xf32> to vector<8x128xf32>
    %12 = arith.addf %9, %11 : vector<8x128xf32>
    %13 = math.tanh %12 : vector<8x128xf32>
    %c0_11 = arith.constant 0 : index
    %c0_12 = arith.constant 0 : index
    %14 = vector.load %arg6[%c0_11, %c0_12] : memref<32x8xf32, #tpu.memory_space<vmem>>, vector<32x8xf32>
    %cst_13 = arith.constant dense<0.000000e+00> : vector<32x128xf32>
    %15 = tpu.matmul %14, %13, %cst_13 {dimension_numbers = #tpu.dot_dimension_numbers<[1], [0], [0], [1], [0, 0, 1, 1], [], []>} : vector<32x8xf32>, vector<8x128xf32>, vector<32x128xf32> -> vector<32x128xf32>
    %c0_14 = arith.constant 0 : index
    %c0_15 = arith.constant 0 : index
    %16 = vector.load %arg7[%c0_14, %c0_15] : memref<32x1xf32, #tpu.memory_space<vmem>>, vector<32x1xf32>
    %17 = vector.broadcast %16 : vector<32x1xf32> to vector<32x128xf32>
    %18 = arith.addf %15, %17 : vector<32x128xf32>
    %cst_16 = arith.constant 0.000000e+00 : f32
    %19 = vector.broadcast %cst_16 : f32 to vector<32x128xf32>
    %20 = arith.maximumf %18, %19 : vector<32x128xf32>
    %c0_17 = arith.constant 0 : index
    %c0_18 = arith.constant 0 : index
    %21 = vector.load %arg8[%c0_17, %c0_18] : memref<16x32xf32, #tpu.memory_space<vmem>>, vector<16x32xf32>
    %cst_19 = arith.constant dense<0.000000e+00> : vector<16x128xf32>
    %22 = tpu.matmul %21, %20, %cst_19 {dimension_numbers = #tpu.dot_dimension_numbers<[1], [0], [0], [1], [0, 0, 1, 1], [], []>} : vector<16x32xf32>, vector<32x128xf32>, vector<16x128xf32> -> vector<16x128xf32>
    %c0_20 = arith.constant 0 : index
    %c0_21 = arith.constant 0 : index
    %23 = vector.load %arg9[%c0_20, %c0_21] : memref<16x1xf32, #tpu.memory_space<vmem>>, vector<16x1xf32>
    %24 = vector.broadcast %23 : vector<16x1xf32> to vector<16x128xf32>
    %25 = arith.addf %22, %24 : vector<16x128xf32>
    %c0_22 = arith.constant 0 : index
    %c0_23 = arith.constant 0 : index
    %26 = vector.load %arg10[%c0_22, %c0_23] : memref<16x128xf32, #tpu.memory_space<vmem>>, vector<16x128xf32>
    tpu.vector_store %arg10[%c0_22, %c0_23], %25 {strides = array<i32>} : memref<16x128xf32, #tpu.memory_space<vmem>>, vector<16x128xf32>,
    return
  }
  func.func @transform_0(%arg0: i32) -> (i32, i32) {
    %c0_i32 = arith.constant 0 : i32
    %c0_i32_0 = arith.constant 0 : i32
    return %c0_i32, %arg0 : i32, i32
  }
  func.func @transform_1(%arg0: i32) -> (i32, i32) {
    %c0_i32 = arith.constant 0 : i32
    %c0_i32_0 = arith.constant 0 : i32
    %c0_i32_1 = arith.constant 0 : i32
    return %c0_i32, %c0_i32_0 : i32, i32
  }
  func.func @transform_2(%arg0: i32) -> (i32, i32) {
    %c0_i32 = arith.constant 0 : i32
    %c0_i32_0 = arith.constant 0 : i32
    %c0_i32_1 = arith.constant 0 : i32
    return %c0_i32, %c0_i32_0 : i32, i32
  }
  func.func @transform_3(%arg0: i32) -> (i32, i32) {
    %c0_i32 = arith.constant 0 : i32
    %c0_i32_0 = arith.constant 0 : i32
    %c0_i32_1 = arith.constant 0 : i32
    return %c0_i32, %c0_i32_0 : i32, i32
  }
  func.func @transform_4(%arg0: i32) -> (i32, i32) {
    %c0_i32 = arith.constant 0 : i32
    %c0_i32_0 = arith.constant 0 : i32
    %c0_i32_1 = arith.constant 0 : i32
    return %c0_i32, %c0_i32_0 : i32, i32
  }
  func.func @transform_5(%arg0: i32) -> (i32, i32) {
    %c0_i32 = arith.constant 0 : i32
    %c0_i32_0 = arith.constant 0 : i32
    %c0_i32_1 = arith.constant 0 : i32
    return %c0_i32, %c0_i32_0 : i32, i32
  }
  func.func @transform_6(%arg0: i32) -> (i32, i32) {
    %c0_i32 = arith.constant 0 : i32
    %c0_i32_0 = arith.constant 0 : i32
    %c0_i32_1 = arith.constant 0 : i32
    return %c0_i32, %c0_i32_0 : i32, i32
  }
  func.func @transform_7(%arg0: i32) -> (i32, i32) {
    %c0_i32 = arith.constant 0 : i32
    %c0_i32_0 = arith.constant 0 : i32
    %c0_i32_1 = arith.constant 0 : i32
    return %c0_i32, %c0_i32_0 : i32, i32
  }
  func.func @transform_8(%arg0: i32) -> (i32, i32) {
    %c0_i32 = arith.constant 0 : i32
    %c0_i32_0 = arith.constant 0 : i32
    %c0_i32_1 = arith.constant 0 : i32
    return %c0_i32, %c0_i32_0 : i32, i32
  }
  func.func @transform_9(%arg0: i32) -> (i32, i32) {
    %c0_i32 = arith.constant 0 : i32
    %c0_i32_0 = arith.constant 0 : i32
    return %c0_i32, %arg0 : i32, i32
  }
}

</mosaic_0001>

<bundles_post_ra>
// kernel: tpu_custom_call.1
= control target key start
LH: loop header
LB: loop body
LE: loop exit
PB: predicated region body
PF: predicated region fallthrough
CT: control target
= control target key end

     0   :  { %vm63_vm0 = vcmask 130048   ;;  %v595_v4 = vmov 0   ;;  %s733_s0 = inlined_call_operand.vmem [shape: f32[16,128], index: 0, kind: input, shape index: {}]   ;;  %s734_s1 = inlined_call_operand.vmem [shape: f32[32,16], index: 1, kind: input, shape index: {}]   ;;  %s735_s2 = inlined_call_operand.vmem [shape: f32[32,1], index: 2, kind: input, shape index: {}]   ;;  %s736_s3 = inlined_call_operand.vmem [shape: f32[8,32], index: 3, kind: input, shape index: {}]   ;;  %s737_s4 = inlined_call_operand.vmem [shape: f32[8,1], index: 4, kind: input, shape index: {}]   ;;  %s738_s5 = inlined_call_operand.vmem [shape: f32[32,8], index: 5, kind: input, shape index: {}]   ;;  %s739_s6 = inlined_call_operand.vmem [shape: f32[32,1], index: 6, kind: input, shape index: {}]   ;;  %s740_s7 = inlined_call_operand.vmem [shape: f32[16,32], index: 7, kind: input, shape index: {}]   ;;  %s741_s8 = inlined_call_operand.vmem [shape: f32[16,1], index: 8, kind: input, shape index: {}]   ;;  %s742_s9 = inlined_call_operand.hbm [shape: f32[16,128], index: 9, kind: output, shape index: {}]  }
   0x1   :  { %v34_v0 = vld [vmem:[%s733_s0 + $0x8] sm:$0xff]  ;;  %v33_v1 = vld [vmem:[%s733_s0] sm:$0xff]  ;;  %569 = vset.pattern.permute.xlu0 %v595_v4  ;;  %v42_v5 = vld [vmem:[%s735_s2 + $0x18] sm:$0xff]  ;;  %570 = vset.pattern.permute.xlu1 %v595_v4 }
   0x2   :  { %v35_v2 = vld [vmem:[%s734_s1] sm:$0xff]  ;;  %523 = vmatprep.subr.mxu0 %v34_v0  ;;  %v36_v3 = vld [vmem:[%s734_s1 + $0x8] sm:$0xff]  ;;  %v37_v6 = vld [vmem:[%s734_s1 + $0x10] sm:$0xff]  ;;  %60 = vperm.xlu0 %569, %v42_v5  }
   0x3   :  { %527 = vmatprep.mubr.msk.f32.mxu0 %vm63_vm0, %v35_v2  ;;  %524 = vmatpush3.msra.mxu0 %v34_v0  ;;  %v40_v7 = vld [vmem:[%s735_s2 + $0x8] sm:$0xff]  ;;  %v41_v8 = vld [vmem:[%s735_s2 + $0x10] sm:$0xff] }
   0x4   :  { %525 = vmatprep.subr.mxu0 %v33_v1  ;;  %50 = vperm.xlu1 %570, %v40_v7  }
   0x5   :  { %526 = vmatpush3.msra.mxu0 %v33_v1 }
   0x6   :  { %528 = vmatmul.mubr.msk.f32.vlgmr.msra.gmra.mxu0 %vm63_vm0, %v36_v3 }
   0x7   :  { %14 = vsyncpa [#allocation3], 0  ;;  %530 = vmatprep.mubr.msk.f32.mxu0 %vm63_vm0, %v37_v6  ;;  %v38_v9 = vld [vmem:[%s734_s1 + $0x18] sm:$0xff]  ;;  %v39_v10 = vld [vmem:[%s735_s2] sm:$0xff]  ;;  %55 = vperm.xlu0 %569, %v41_v8   ;;  %v596_v18 = vmov 0.0   ;;  %vm597_vm1 = vmmov 0  }
   0x8   :  { %v166_v11 = vld [vmem:[%s737_s4] sm:$0xff]  ;;  %45 = vperm.xlu1 %570, %v39_v10   ;;  %v254_v12 = vld [vmem:[%s739_s6 + $0x18] sm:$0xff]  ;;  %v253_v13 = vld [vmem:[%s739_s6 + $0x10] sm:$0xff]  ;;  %533 = vmatprep.subr.mxu1 %v596_v18  ;;  %vm172_vm2 = vcmask 261120   ;;  %vm275_vm3 = vcmask 64512   ;;  %s598_s27 = smov [#allocation2]  }
   0x9   :  { %v252_v14 = vld [vmem:[%s739_s6 + $0x8] sm:$0xff]  ;;  %v251_v15 = vld [vmem:[%s739_s6] sm:$0xff]  ;;  %541 = vmatprep.mubr.msk.f32.mxu1 %vm597_vm1, %v596_v18  ;;  %v249_v43 = vld [vmem:[%s738_s5 + $0x10] sm:$0xff]  ;;  %s479_s28 = sshll.u32 %s598_s27, 4  ;;  %s480_s28 = int_to_ptr.vmem [resolvable:$true] %s479_s28 }
   0xa   :  { %531 = vmatmul.mubr.msk.f32.gmra.mxu0 %vm63_vm0, %v38_v9  ;;  %v379_v16 = vld [vmem:[%s741_s8] sm:$0xff]  ;;  %v380_v17 = vld [vmem:[%s741_s8 + $0x8] sm:$0xff]  ;;  %v250_v44 = vld [vmem:[%s738_s5 + $0x18] sm:$0xff]  ;;  %s573_s29 = scalar_lea.vmem %s480_s28, 256  ;;  %p578_p1 = scmp.lt.s32.totalorder %s480_s28, %s480_s28 }
   0xb   :  { %169 = vperm.xlu0 %569, %v166_v11   ;;  %v165_v35 = vld [vmem:[%s736_s3] sm:$0xff]  ;;  %v248_v42 = vld [vmem:[%s738_s5 + $0x8] sm:$0xff]  ;;  %p574_p0 = scmp.ne.s32.totalorder %s480_s28, %s573_s29  ;;  %p579_p2 = scmp.lt.s32.totalorder %s573_s29, %s573_s29 }
   0xc   :  { %272 = vperm.xlu1 %570, %v254_v12   ;;  %v247_v36 = vld [vmem:[%s738_s5] sm:$0xff]  ;;  %v378_v62 = vld [vmem:[%s740_s7 + $0x8] sm:$0xff] }
   0xd   :  { %546 = vmatprep.mubr.msk.f32.mxu0 %vm275_vm3, %v247_v36  ;;  %v377_v45 = vld [vmem:[%s740_s7] sm:$0xff]  ;;  %p580_p3 = por %p579_p2, %p578_p1 }
   0xf   :  { %267 = vperm.xlu0 %569, %v253_v13   ;;  %p581_p4 = pnand %p580_p3, %p574_p0 }
  0x10   :  { %262 = vperm.xlu1 %570, %v252_v14  }
  0x13   :  { %257 = vperm.xlu0 %569, %v251_v15  }
  0x14   :  { %383 = vperm.xlu1 %570, %v379_v16  }
  0x17   :  { %388 = vperm.xlu0 %569, %v380_v17  }
  0x7d   :  { %v61_v19 = vpop.permute.xlu0 %60 }
  0x7f   :  { %v51_v21 = vpop.permute.xlu1 %50 }
  0x82   :  { %v56_v25 = vpop.permute.xlu0 %55 }
  0x83   :  { %v46_v30 = vpop.permute.xlu1 %45 }
  0x86   :  { %v170_v37 = vpop.permute.xlu0 %169 }
  0x87   :  { %v273_v46 = vpop.permute.xlu1 %272 }
  0x8a   :  { %v268_v48 = vpop.permute.xlu0 %267 }
  0x8b   :  { %v263_v52 = vpop.permute.xlu1 %262 }
  0x8e   :  { %v258_v57 = vpop.permute.xlu0 %257 }
  0x8f   :  { %v384_v2 = vpop.permute.xlu1 %383 }
  0x92   :  { %v389_v63 = vpop.permute.xlu0 %388 }
  0xc6   :  { %v529_v20 = vpop.f32.mrf.mxu0 }
  0xc7   :  { %v148_v27 = vadd.f32 %v529_v20, %v51_v21 }
  0xc8   :  { %v142_v22 = vpop.f32.mrf.mxu0 }
  0xc9   :  { %v143_v31 = vadd.f32 %v142_v22, %v46_v30  ;;  %v162_v33 = vmax.f32 %v148_v27, 0.0 }
  0xca   :  { %v532_v23 = vpop.f32.mrf.mxu0 }
  0xcb   :  { %v158_v24 = vadd.f32 %v532_v23, %v61_v19  ;;  %v161_v34 = vmax.f32 %v143_v31, 0.0 }
  0xcc   :  { %v152_v26 = vpop.f32.mrf.mxu0 }
  0xcd   :  { %v164_v28 = vmax.f32 %v158_v24, 0.0  ;;  %v153_v29 = vadd.f32 %v152_v26, %v56_v25 }
  0xcf   :  { %v163_v32 = vmax.f32 %v153_v29, 0.0  ;;  %534 = vmatpush3.msra.mxu1 %v164_v28 }
  0xd0   :  { %535 = vmatprep.subr.mxu1 %v596_v18 }
  0xd1   :  { %536 = vmatpush3.msra.mxu1 %v163_v32 }
  0xd2   :  { %537 = vmatprep.subr.mxu1 %v596_v18 }
  0xd3   :  { %538 = vmatpush3.msra.mxu1 %v162_v33 }
  0xd4   :  { %539 = vmatprep.subr.mxu1 %v596_v18 }
  0xd5   :  { %540 = vmatpush3.msra.mxu1 %v161_v34 }
  0xd6   :  { %542 = vmatmul.mubr.msk.f32.vlgmr.msra.gmra.mxu1 %vm172_vm2, %v165_v35 }
  0xd7   :  { %560 = vmatprep.mubr.msk.f32.mxu1 %vm172_vm2, %v377_v45 }
 0x196   :  { %v242_v38 = vpop.f32.mrf.mxu1 }
 0x197   :  { %v243_v39 = vadd.f32 %v242_v38, %v170_v37 }
 0x198   :  { %v543_v40 = vpop.f32.mrf.mxu1 }
 0x199   :  { %571 = vtanh.f32 %v243_v39 }
 0x1a6   :  { %v572_v41 = vpop.eup %571 }
 0x1a7   :  { %544 = vmatprep.subr.mxu0 %v572_v41 }
 0x1a8   :  { %545 = vmatpush3.msra.mxu0 %v572_v41 }
 0x1a9   :  { %547 = vmatmul.mubr.msk.f32.vlgmr.msra.gmra.mxu0 %vm275_vm3, %v248_v42 }
 0x1aa   :  { %549 = vmatprep.mubr.msk.f32.mxu0 %vm275_vm3, %v249_v43 }
 0x1ad   :  { %550 = vmatmul.mubr.msk.f32.gmra.mxu0 %vm275_vm3, %v250_v44 }
 0x269   :  { %v548_v47 = vpop.f32.mrf.mxu0 }
 0x26a   :  { %v360_v54 = vadd.f32 %v548_v47, %v263_v52 }
 0x26b   :  { %v354_v49 = vpop.f32.mrf.mxu0 }
 0x26c   :  { %v355_v58 = vadd.f32 %v354_v49, %v258_v57  ;;  %v374_v60 = vmax.f32 %v360_v54, 0.0 }
 0x26d   :  { %v551_v50 = vpop.f32.mrf.mxu0 }
 0x26e   :  { %v370_v51 = vadd.f32 %v551_v50, %v273_v46  ;;  %v373_v61 = vmax.f32 %v355_v58, 0.0 }
 0x26f   :  { %v364_v53 = vpop.f32.mrf.mxu0 }
 0x270   :  { %v376_v55 = vmax.f32 %v370_v51, 0.0  ;;  %v365_v56 = vadd.f32 %v364_v53, %v268_v48 }
 0x272   :  { %v375_v59 = vmax.f32 %v365_v56, 0.0  ;;  %552 = vmatprep.subr.mxu1 %v376_v55 }
 0x273   :  { %553 = vmatpush3.msra.mxu1 %v376_v55 }
 0x274   :  { %554 = vmatprep.subr.mxu1 %v375_v59 }
 0x275   :  { %555 = vmatpush3.msra.mxu1 %v375_v59 }
 0x276   :  { %556 = vmatprep.subr.mxu1 %v374_v60 }
 0x277   :  { %557 = vmatpush3.msra.mxu1 %v374_v60 }
 0x278   :  { %558 = vmatprep.subr.mxu1 %v373_v61 }
 0x279   :  { %559 = vmatpush3.msra.mxu1 %v373_v61 }
 0x27a   :  { %561 = vmatmul.mubr.msk.f32.vlgmr.msra.gmra.mxu1 %vm172_vm2, %v378_v62 }
 0x33a   :  { %v562_v0 = vpop.f32.mrf.mxu1 }
 0x33b   :  { %v469_v1 = vadd.f32 %v562_v0, %v389_v63 }
 0x33c   :  { %v463_v3 = vpop.f32.mrf.mxu1 }
 0x33d   :  { %473 = vst [vmem:[#allocation2 + $0x8] sm:$0xff] %v469_v1  ;;  %v464_v4 = vadd.f32 %v463_v3, %v384_v2 }
 0x33f   :  { %472 = vst [vmem:[#allocation2] sm:$0xff] %v464_v4 }
 0x340   :  { %584 = shalt.err (!%p581_p4)
}
 0x341   :  { %s599_s7 = smov 128   ;;  %s600_s30 = smov 8  }
 0x342   :  { %485 = dma.vmem_to_hbm [thread:$0]  %s480_s28, 256, %s742_s9, [#allocation3], %s599_s7, %s599_s7, %s600_s30  }
 0x343   :  { %593 = dma.done.wait [#allocation3], 256  }
 0x344   :  { %594 = vsyncadd [#allocation3], 4294967040 }
 0x345   :  { %489 = vsyncpa [#allocation3], 1 }

</bundles_post_ra>
